<compile_context>
chip_gen: v5e
topology: v5e:2x2
jax: 0.10.0
libtpu: 0.0.40
codegen_flags: <defaults>
</compile_context>

<pallas_src>
import functools

import jax
import jax.numpy as jnp
from jax.experimental import pallas as pl
from jax.experimental.pallas import tpu as pltpu


def csam_kernel(x_ref, w1_ref, b1_ref, w2_ref, b2_ref, wsp_ref, bsp_ref, o_ref):
    _, _, HW = x_ref.shape
    x = x_ref[...].astype(jnp.float32)                      # (Bt, C, HW)

    # ---- channel attention: GAP -> 1x1 conv -> ReLU -> 1x1 conv -> sigmoid ----
    gap = jnp.mean(x, axis=-1)                              # (Bt, C)   lane reduce
    h = jnp.dot(gap, w1_ref[...],
                preferred_element_type=jnp.float32) + b1_ref[...]
    h = jnp.maximum(h, 0.0)                                 # (Bt, Cr)
    s = jax.nn.sigmoid(
        jnp.dot(h, w2_ref[...],
                preferred_element_type=jnp.float32) + b2_ref[...])   # (Bt, C)
    ca = x * s[:, :, None]                                  # (Bt, C, HW)

    # ---- spatial attention: channel max/mean -> 7x7 conv as MXU matmul ----
    mx = jnp.max(ca, axis=1)                                # (Bt, HW)  sublane reduce
    av = jnp.mean(ca, axis=1)                               # (Bt, HW)
    conv = (jnp.dot(mx, wsp_ref[:HW, :], preferred_element_type=jnp.float32)
            + jnp.dot(av, wsp_ref[HW:, :], preferred_element_type=jnp.float32)
            + bsp_ref[0])                                   # (Bt, HW)
    sa = jax.nn.sigmoid(conv)

    o_ref[...] = (ca * sa[:, None, :]).astype(o_ref.dtype)  # lane-dense store


def _spatial_conv_as_matmul(wsp, H, W):
    """(2, 7, 7) conv kernel -> (2*H*W, H*W) Toeplitz matrix, pad=3 baked in.

    Row index = c*H*W + r*W + k (input channel / position), col = i*W + j
    (output position); entry = wsp[c, r - i + 3, k - j + 3] when in range.
    """
    r = jnp.arange(H)
    i = jnp.arange(H)
    k = jnp.arange(W)
    j = jnp.arange(W)
    dr = r[:, None] - i[None, :] + 3                        # (H, H)
    dk = k[:, None] - j[None, :] + 3                        # (W, W)
    mr = (dr >= 0) & (dr < 7)
    mk = (dk >= 0) & (dk < 7)
    g = wsp[:, jnp.clip(dr, 0, 6)][:, :, :, jnp.clip(dk, 0, 6)]  # (2,H,H,W,W): (c,r,i,k,j)
    mask = mr[None, :, :, None, None] & mk[None, None, None, :, :]
    wfull = jnp.where(mask, g, 0.0)                         # (c, r, i, k, j)
    wfull = jnp.transpose(wfull, (0, 1, 3, 2, 4))           # (c, r, k, i, j)
    return wfull.reshape(2 * H * W, H * W).astype(jnp.float32)


@functools.partial(jax.jit, static_argnames=("images_per_step",))
def channel_spatial_attention(x_nchw, w1, b1, w2, b2, wsp, bsp,
                              images_per_step=None):
    B, C, H, W = x_nchw.shape
    Cr = w1.shape[1]
    HW = H * W

    if images_per_step is None:
        # >= 2 grid steps when B > 1 (megacore), several images per step for
        # larger batches to amortize per-step overhead.
        images_per_step = max(1, B // 2)
    while B % images_per_step != 0:
        images_per_step -= 1
    Bt = images_per_step

    x = x_nchw.reshape(B, C, HW)                            # pure reshape, no transpose
    wsp_mat = _spatial_conv_as_matmul(wsp.astype(jnp.float32), H, W)
    bsp_arr = bsp.reshape(1).astype(jnp.float32)

    out = pl.pallas_call(
        csam_kernel,
        out_shape=jax.ShapeDtypeStruct((B, C, HW), x.dtype),
        grid=(B // Bt,),
        in_specs=[
            pl.BlockSpec((Bt, C, HW), lambda b: (b, 0, 0)),        # x
            pl.BlockSpec((C, Cr), lambda b: (0, 0)),               # w1 (resident)
            pl.BlockSpec((1, Cr), lambda b: (0, 0)),               # b1
            pl.BlockSpec((Cr, C), lambda b: (0, 0)),               # w2
            pl.BlockSpec((1, C), lambda b: (0, 0)),                # b2
            pl.BlockSpec((2 * HW, HW), lambda b: (0, 0)),          # spatial conv Toeplitz
            pl.BlockSpec(memory_space=pltpu.MemorySpace.SMEM),     # bsp (1,) scalar
        ],
        out_specs=pl.BlockSpec((Bt, C, HW), lambda b: (b, 0, 0)),
        compiler_params=pltpu.CompilerParams(
            dimension_semantics=("parallel",)),
    )(x, w1, b1.reshape(1, Cr), w2, b2.reshape(1, C), wsp_mat, bsp_arr)

    return out.reshape(B, C, H, W)


def reference(x_nchw, w1, b1, w2, b2, wsp, bsp):
    """Pure-JAX reference matching the PyTorch forward."""
    gap = jnp.mean(x_nchw, axis=(2, 3))                     # (B, C)
    h = jnp.maximum(gap @ w1 + b1, 0.0)
    s = jax.nn.sigmoid(h @ w2 + b2)                         # (B, C)
    ca = x_nchw * s[:, :, None, None]
    mx = jnp.max(ca, axis=1, keepdims=True)
    av = jnp.mean(ca, axis=1, keepdims=True)
    pool = jnp.concatenate([mx, av], axis=1)                # (B, 2, H, W)
    conv = jax.lax.conv_general_dilated(
        pool, wsp[None], window_strides=(1, 1),
        padding=[(3, 3), (3, 3)],
        dimension_numbers=("NCHW", "OIHW", "NCHW")) + bsp
    sa = jax.nn.sigmoid(conv)
    return sa * ca


if __name__ == "__main__":
    # num_features=32, reduction_ratio=16 -> hidden=2 (matches module __init__)
    B, C, H, W = 2, 32, 16, 16
    Cr = C // 16

    key = jax.random.PRNGKey(0)
    kx, k1, kb1, k2, kb2, ksp, kbsp = jax.random.split(key, 7)
    x = jax.random.normal(kx, (B, C, H, W), dtype=jnp.float32)

    # deterministic synthetic parameters (1x1 convs expressed as dense mats)
    w1 = 0.1 * jax.random.normal(k1, (C, Cr), dtype=jnp.float32)
    b1 = 0.1 * jax.random.normal(kb1, (Cr,), dtype=jnp.float32)
    w2 = 0.1 * jax.random.normal(k2, (Cr, C), dtype=jnp.float32)
    b2 = 0.1 * jax.random.normal(kb2, (C,), dtype=jnp.float32)
    wsp = 0.1 * jax.random.normal(ksp, (2, 7, 7), dtype=jnp.float32)
    bsp = 0.1 * jax.random.normal(kbsp, (), dtype=jnp.float32)

    out = channel_spatial_attention(x, w1, b1, w2, b2, wsp, bsp)
    out = jax.block_until_ready(out)

    ref = reference(x, w1, b1, w2, b2, wsp, bsp)
    max_err = float(jnp.max(jnp.abs(out - ref)))
    assert out.shape == (B, C, H, W)
    assert max_err < 1e-3, f"mismatch vs reference: {max_err}"

    print("KERNEL_OK")
</pallas_src>

<mosaic_0001>
module attributes {stable_mosaic.version = 11 : i64} {
  func.func @csam_kernel(%arg0: i32, %arg1: memref<1x32x256xf32, #tpu.memory_space<vmem>>, %arg2: memref<32x2xf32, #tpu.memory_space<vmem>>, %arg3: memref<1x2xf32, #tpu.memory_space<vmem>>, %arg4: memref<2x32xf32, #tpu.memory_space<vmem>>, %arg5: memref<1x32xf32, #tpu.memory_space<vmem>>, %arg6: memref<512x256xf32, #tpu.memory_space<vmem>>, %arg7: memref<1xf32, #tpu.memory_space<smem>>, %arg8: memref<1x32x256xf32, #tpu.memory_space<vmem>>) attributes {dimension_semantics = [#tpu.dimension_semantics<parallel>], iteration_bounds = array<i64: 2>, scalar_prefetch = 0 : i64, scratch_operands = 0 : i64, tpu.core_type = #tpu.core_type<tc>, window_params = [{transform_indices = @transform_0, window_bounds = array<i64: 1, 32, 256>}, {pipeline_mode = #tpu.pipeline_mode<synchronous>, transform_indices = @transform_1, window_bounds = array<i64: 32, 2>}, {pipeline_mode = #tpu.pipeline_mode<synchronous>, transform_indices = @transform_2, window_bounds = array<i64: 1, 2>}, {pipeline_mode = #tpu.pipeline_mode<synchronous>, transform_indices = @transform_3, window_bounds = array<i64: 2, 32>}, {pipeline_mode = #tpu.pipeline_mode<synchronous>, transform_indices = @transform_4, window_bounds = array<i64: 1, 32>}, {pipeline_mode = #tpu.pipeline_mode<synchronous>, transform_indices = @transform_5, window_bounds = array<i64: 512, 256>}, {transform_indices = @transform_6, window_bounds = array<i64: 1>}, {transform_indices = @transform_7, window_bounds = array<i64: 1, 32, 256>}]} {
    %c0 = arith.constant 0 : index
    %c0_0 = arith.constant 0 : index
    %c0_1 = arith.constant 0 : index
    %0 = vector.load %arg1[%c0, %c0_0, %c0_1] : memref<1x32x256xf32, #tpu.memory_space<vmem>>, vector<1x32x256xf32>
    %cst = arith.constant dense<0.000000e+00> : vector<1x32xf32>
    %1 = vector.multi_reduction <add>, %0, %cst [2] : vector<1x32x256xf32> to vector<1x32xf32>
    %cst_2 = arith.constant 2.560000e+02 : f32
    %2 = vector.broadcast %cst_2 : f32 to vector<1x32xf32>
    %3 = arith.divf %1, %2 : vector<1x32xf32>
    %c0_3 = arith.constant 0 : index
    %c0_4 = arith.constant 0 : index
    %4 = vector.load %arg2[%c0_3, %c0_4] : memref<32x2xf32, #tpu.memory_space<vmem>>, vector<32x2xf32>
    %cst_5 = arith.constant dense<0.000000e+00> : vector<1x2xf32>
    %5 = tpu.matmul %3, %4, %cst_5 {dimension_numbers = #tpu.dot_dimension_numbers<[1], [0], [0], [1], [0, 0, 1, 1], [], []>} : vector<1x32xf32>, vector<32x2xf32>, vector<1x2xf32> -> vector<1x2xf32>
    %c0_6 = arith.constant 0 : index
    %c0_7 = arith.constant 0 : index
    %6 = vector.load %arg3[%c0_6, %c0_7] : memref<1x2xf32, #tpu.memory_space<vmem>>, vector<1x2xf32>
    %7 = arith.addf %5, %6 : vector<1x2xf32>
    %cst_8 = arith.constant 0.000000e+00 : f32
    %8 = vector.broadcast %cst_8 : f32 to vector<1x2xf32>
    %9 = arith.maximumf %7, %8 : vector<1x2xf32>
    %c0_9 = arith.constant 0 : index
    %c0_10 = arith.constant 0 : index
    %10 = vector.load %arg4[%c0_9, %c0_10] : memref<2x32xf32, #tpu.memory_space<vmem>>, vector<2x32xf32>
    %cst_11 = arith.constant dense<0.000000e+00> : vector<1x32xf32>
    %11 = tpu.matmul %9, %10, %cst_11 {dimension_numbers = #tpu.dot_dimension_numbers<[1], [0], [0], [1], [0, 0, 1, 1], [], []>} : vector<1x2xf32>, vector<2x32xf32>, vector<1x32xf32> -> vector<1x32xf32>
    %c0_12 = arith.constant 0 : index
    %c0_13 = arith.constant 0 : index
    %12 = vector.load %arg5[%c0_12, %c0_13] : memref<1x32xf32, #tpu.memory_space<vmem>>, vector<1x32xf32>
    %13 = arith.addf %11, %12 : vector<1x32xf32>
    %14 = arith.negf %13 : vector<1x32xf32>
    %15 = math.exp %14 : vector<1x32xf32>
    %cst_14 = arith.constant 1.000000e+00 : f32
    %16 = vector.broadcast %cst_14 : f32 to vector<1x32xf32>
    %17 = arith.addf %16, %15 : vector<1x32xf32>
    %18 = arith.divf %16, %17 : vector<1x32xf32>
    %19 = vector.shape_cast %18 : vector<1x32xf32> to vector<1x32x1xf32>
    %20 = vector.broadcast %19 : vector<1x32x1xf32> to vector<1x32x256xf32>
    %21 = arith.mulf %0, %20 : vector<1x32x256xf32>
    %cst_15 = arith.constant dense<0xFF800000> : vector<1x256xf32>
    %22 = vector.multi_reduction <maximumf>, %21, %cst_15 [1] : vector<1x32x256xf32> to vector<1x256xf32>
    %cst_16 = arith.constant dense<0.000000e+00> : vector<1x256xf32>
    %23 = vector.multi_reduction <add>, %21, %cst_16 [1] : vector<1x32x256xf32> to vector<1x256xf32>
    %cst_17 = arith.constant 3.200000e+01 : f32
    %24 = vector.broadcast %cst_17 : f32 to vector<1x256xf32>
    %25 = arith.divf %23, %24 : vector<1x256xf32>
    %c0_18 = arith.constant 0 : index
    %c0_19 = arith.constant 0 : index
    %26 = vector.load %arg6[%c0_18, %c0_19] : memref<512x256xf32, #tpu.memory_space<vmem>>, vector<256x256xf32>
    %cst_20 = arith.constant dense<0.000000e+00> : vector<1x256xf32>
    %27 = tpu.matmul %22, %26, %cst_20 {dimension_numbers = #tpu.dot_dimension_numbers<[1], [0], [0], [1], [0, 0, 1, 1], [], []>} : vector<1x256xf32>, vector<256x256xf32>, vector<1x256xf32> -> vector<1x256xf32>
    %c256 = arith.constant 256 : index
    %c0_21 = arith.constant 0 : index
    %28 = vector.load %arg6[%c256, %c0_21] : memref<512x256xf32, #tpu.memory_space<vmem>>, vector<256x256xf32>
    %cst_22 = arith.constant dense<0.000000e+00> : vector<1x256xf32>
    %29 = tpu.matmul %25, %28, %cst_22 {dimension_numbers = #tpu.dot_dimension_numbers<[1], [0], [0], [1], [0, 0, 1, 1], [], []>} : vector<1x256xf32>, vector<256x256xf32>, vector<1x256xf32> -> vector<1x256xf32>
    %30 = arith.addf %27, %29 : vector<1x256xf32>
    %c0_23 = arith.constant 0 : index
    %31 = memref.load %arg7[%c0_23] : memref<1xf32, #tpu.memory_space<smem>>
    %32 = vector.broadcast %31 : f32 to vector<1x256xf32>
    %33 = arith.addf %30, %32 : vector<1x256xf32>
    %34 = arith.negf %33 : vector<1x256xf32>
    %35 = math.exp %34 : vector<1x256xf32>
    %cst_24 = arith.constant 1.000000e+00 : f32
    %36 = vector.broadcast %cst_24 : f32 to vector<1x256xf32>
    %37 = arith.addf %36, %35 : vector<1x256xf32>
    %38 = arith.divf %36, %37 : vector<1x256xf32>
    %39 = vector.shape_cast %38 : vector<1x256xf32> to vector<1x1x256xf32>
    %40 = vector.broadcast %39 : vector<1x1x256xf32> to vector<1x32x256xf32>
    %41 = arith.mulf %21, %40 : vector<1x32x256xf32>
    %c0_25 = arith.constant 0 : index
    %c0_26 = arith.constant 0 : index
    %c0_27 = arith.constant 0 : index
    %42 = vector.load %arg8[%c0_25, %c0_26, %c0_27] : memref<1x32x256xf32, #tpu.memory_space<vmem>>, vector<1x32x256xf32>
    tpu.vector_store %arg8[%c0_25, %c0_26, %c0_27], %41 {strides = array<i32>} : memref<1x32x256xf32, #tpu.memory_space<vmem>>, vector<1x32x256xf32>,
    return
  }
  func.func @transform_0(%arg0: i32) -> (i32, i32, i32) {
    %c0_i32 = arith.constant 0 : i32
    %c0_i32_0 = arith.constant 0 : i32
    %c0_i32_1 = arith.constant 0 : i32
    return %arg0, %c0_i32, %c0_i32_0 : i32, i32, i32
  }
  func.func @transform_1(%arg0: i32) -> (i32, i32) {
    %c0_i32 = arith.constant 0 : i32
    %c0_i32_0 = arith.constant 0 : i32
    %c0_i32_1 = arith.constant 0 : i32
    return %c0_i32, %c0_i32_0 : i32, i32
  }
  func.func @transform_2(%arg0: i32) -> (i32, i32) {
    %c0_i32 = arith.constant 0 : i32
    %c0_i32_0 = arith.constant 0 : i32
    %c0_i32_1 = arith.constant 0 : i32
    return %c0_i32, %c0_i32_0 : i32, i32
  }
  func.func @transform_3(%arg0: i32) -> (i32, i32) {
    %c0_i32 = arith.constant 0 : i32
    %c0_i32_0 = arith.constant 0 : i32
    %c0_i32_1 = arith.constant 0 : i32
    return %c0_i32, %c0_i32_0 : i32, i32
  }
  func.func @transform_4(%arg0: i32) -> (i32, i32) {
    %c0_i32 = arith.constant 0 : i32
    %c0_i32_0 = arith.constant 0 : i32
    %c0_i32_1 = arith.constant 0 : i32
    return %c0_i32, %c0_i32_0 : i32, i32
  }
  func.func @transform_5(%arg0: i32) -> (i32, i32) {
    %c0_i32 = arith.constant 0 : i32
    %c0_i32_0 = arith.constant 0 : i32
    %c0_i32_1 = arith.constant 0 : i32
    return %c0_i32, %c0_i32_0 : i32, i32
  }
  func.func @transform_6(%arg0: i32) -> i32 {
    %c0_i32 = arith.constant 0 : i32
    %c0_i32_0 = arith.constant 0 : i32
    return %c0_i32 : i32
  }
  func.func @transform_7(%arg0: i32) -> (i32, i32, i32) {
    %c0_i32 = arith.constant 0 : i32
    %c0_i32_0 = arith.constant 0 : i32
    %c0_i32_1 = arith.constant 0 : i32
    return %arg0, %c0_i32, %c0_i32_0 : i32, i32, i32
  }
}

</mosaic_0001>

<bundles_post_ra>
// kernel: channel_spatial_attention.1
= control target key start
LH: loop header
LB: loop body
LE: loop exit
PB: predicated region body
PF: predicated region fallthrough
CT: control target
= control target key end

     0   :  { %s992_s26 = smov 0   ;;  %s1503_s0 = inlined_call_operand.vmem [shape: f32[2,32,256], index: 0, kind: input, shape index: {}]   ;;  %s1504_s1 = inlined_call_operand.vmem [shape: f32[32,2], index: 1, kind: input, shape index: {}]   ;;  %s1505_s2 = inlined_call_operand.vmem [shape: f32[1,2], index: 2, kind: input, shape index: {}]   ;;  %s1506_s3 = inlined_call_operand.vmem [shape: f32[2,32], index: 3, kind: input, shape index: {}]   ;;  %s1507_s4 = inlined_call_operand.vmem [shape: f32[1,32], index: 4, kind: input, shape index: {}]   ;;  %s1508_s5 = inlined_call_operand.vmem [shape: f32[512,256], index: 5, kind: input, shape index: {}]   ;;  %s1509_s6 = inlined_call_operand.<no memory space> [shape: f32[1], index: 6, kind: input, shape index: {}]   ;;  %s1510_s7 = inlined_call_operand.vmem [shape: f32[2,32,256], index: 7, kind: output, shape index: {}]  }
   0x1   :  { %12 = sst [smem:[#allocation2]] %s1509_s6 }
   0x2 LB: > { %s889_s27 = sadd.s32 4294967295, %s945_s26   ;;  %p893_p0 = scmp.ge.s32.totalorder %s945_s26, 1  ;;  %s945_s26 = sphi %s992_s26, %s18_s26  }
   0x3   : > { %p238_p1 = scmp.lt.s32.totalorder %s945_s26, 3 }
   0x5   : > { %p239_p2 = pnand %p893_p0, %p238_p1 }
   0x6   : > { %p270_p3 = scmp.lt.s32.totalorder (!%p239_p2), %s889_s27, 1  ;;  %s774_s28 = sld [smem:[#allocation2]] (!%p239_p2) }
   0x7   : > { %242 = sbr.rel (%p239_p2) target bundleno = 755 (0x2f3), region = 48 }
   0xc   : > { %s1512_s27 = smov (!%p270_p3, %s889_s27), 1  ;;  %v314_v12 = vld [vmem:[%s1504_s1 + $0x18] sm:$0xff]  ;;  %v313_v13 = vld [vmem:[%s1504_s1 + $0x10] sm:$0xff]  ;;  %v947_v14 = vmov 256.0   ;;  %v312_v15 = vld [vmem:[%s1504_s1 + $0x8] sm:$0xff]  ;;  %v320_v22 = vlaneseq  ;;  %vm325_vm1 = vcmask 130112  }
   0xd   : > { %s906_s6 = sshll.u32 %s1512_s27, 6  ;;  %350 = vmatpush.msra.mxu0 %v314_v12  ;;  %923 = vrcp.f32 %v947_v14  ;;  %v311_v16 = vld [vmem:[%s1504_s1] sm:$0xff]  ;;  %vm329_vm2 = vcmask 195712   ;;  %vm333_vm3 = vcmask 261312   ;;  %vm335_vm4 = vcmask 261120   ;;  %v580_v57 = vld [vmem:[%s1508_s5 + $0x2f0] sm:$0xff] }
   0xe   : > { %s274_s30 = scalar_lea.vmem %s1503_s0, %s906_s6  ;;  %v321_v26 = vand.u32 127, %v320_v22  ;;  %v359_v43 = vld [vmem:[%s1506_s3] sm:$0x3]  ;;  %vm365_vm5 = vcmask 1041408   ;;  %vm361_vm6 = vcmask 15360   ;;  %v1050_v48 = vshrl.u32 %v320_v22, 7  ;;  %614 = vmatpush.msra.mxu2 %v580_v57  ;;  %s279_s8 = scalar_lea.vmem %s1510_s7, %s906_s6 }
   0xf   : > { %v1008_v0 = vld [vmem:[%s274_s30] sm:$0xff]  ;;  %v1010_v1 = vld [vmem:[%s274_s30 + $0x8] sm:$0xff]  ;;  %v1020_v6 = vld [vmem:[%s274_s30 + $0x10] sm:$0xff]  ;;  %351 = vmatpush.msra.mxu0 %v313_v13  ;;  %899 = vmatpush.msk.msra.mxu1 %vm365_vm5, %v359_v43 }
  0x10   : > { %v1012_v2 = vld [vmem:[%s274_s30 + $0x20] sm:$0xff]  ;;  %v288_v3 = vadd.f32 %v1010_v1, %v1008_v0  ;;  %v1016_v4 = vld [vmem:[%s274_s30 + $0x28] sm:$0xff]  ;;  %v1022_v7 = vld [vmem:[%s274_s30 + $0x18] sm:$0xff]  ;;  %v323_v28 = vadd.s32 4294967288, %v321_v26  ;;  %v327_v29 = vadd.s32 4294967280, %v321_v26  ;;  %v331_v32 = vadd.s32 4294967272, %v321_v26  ;;  %918 = vset.pattern.permute.xlu2 %v1050_v48 }
  0x11   : > { %v294_v5 = vadd.f32 %v1016_v4, %v1012_v2  ;;  %v1024_v8 = vld [vmem:[%s274_s30 + $0x30] sm:$0xff]  ;;  %v1026_v9 = vld [vmem:[%s274_s30 + $0x38] sm:$0xff]  ;;  %v291_v10 = vadd.f32 %v1022_v7, %v1020_v6  ;;  %352 = vmatpush.msra.mxu0 %v312_v15  ;;  %v315_v44 = vld [vmem:[%s1505_s2] sm:$0x1]  ;;  %v1054_v49 = vadd.s32 24, %v1050_v48  ;;  %v423_v50 = vadd.s32 16, %v1050_v48 }
  0x12   : > { %289 = vadd.xlane.f32.xlu0 %v288_v3  ;;  %v297_v11 = vadd.f32 %v1026_v9, %v1024_v8  ;;  %v360_v51 = vld [vmem:[%s1507_s4] sm:$0x1]  ;;  %v612_v58 = vld [vmem:[%s1508_s5 + $0x3f0] sm:$0xff]  ;;  %v581_v59 = vld [vmem:[%s1508_s5 + $0x2f8] sm:$0xff] }
  0x13   : > { %295 = vadd.xlane.f32.xlu1 %v294_v5  ;;  %353 = vmatpush.msra.mxu0 %v311_v16  ;;  %v924_v17 = vpop.eup %923  ;;  %v613_v60 = vld [vmem:[%s1508_s5 + $0x3f8] sm:$0xff]  ;;  %v578_v61 = vld [vmem:[%s1508_s5 + $0x2e0] sm:$0xff]  ;;  %v579_v3 = vld [vmem:[%s1508_s5 + $0x2e8] sm:$0xff] }
  0x14   : > { %v301_v18 = vmul.f32 256.0, %v924_v17  ;;  %vm305_vm0 = vweird.f32 %v924_v17  ;;  %921 = vset.pattern.permute.xlu1 %v1054_v49  ;;  %920 = vset.pattern.permute.xlu0 %v423_v50  ;;  %v610_v62 = vld [vmem:[%s1508_s5 + $0x3e0] sm:$0xff]  ;;  %v611_v5 = vld [vmem:[%s1508_s5 + $0x3e8] sm:$0xff]  ;;  %v608_v12 = vld [vmem:[%s1508_s5 + $0x3d0] sm:$0xff] }
  0x15   : > { %634 = vmatpush.msra.mxu3 %v612_v58  ;;  %654 = vmatpush.msrb.mxu1 %v581_v59  ;;  %v577_v13 = vld [vmem:[%s1508_s5 + $0x2d8] sm:$0xff]  ;;  %v574_v15 = vld [vmem:[%s1508_s5 + $0x2c0] sm:$0xff]  ;;  %v604_v22 = vld [vmem:[%s1508_s5 + $0x3b0] sm:$0xff] }
  0x16   : > { %v302_v19 = vsub.f32 1.0, %v301_v18  ;;  %674 = vmatpush.msrb.mxu0 %v613_v60  ;;  %615 = vmatpush.msra.mxu2 %v578_v61  ;;  %v609_v14 = vld [vmem:[%s1508_s5 + $0x3d8] sm:$0xff]  ;;  %v606_v16 = vld [vmem:[%s1508_s5 + $0x3c0] sm:$0xff]  ;;  %v575_v18 = vld [vmem:[%s1508_s5 + $0x2c8] sm:$0xff] }
  0x17   : > { %635 = vmatpush.msra.mxu3 %v610_v62  ;;  %655 = vmatpush.msrb.mxu1 %v579_v3  ;;  %v567_v43 = vld [vmem:[%s1508_s5 + $0x288] sm:$0xff]  ;;  %v594_v50 = vld [vmem:[%s1508_s5 + $0x360] sm:$0xff]  ;;  %v556_v61 = vld [vmem:[%s1508_s5 + $0x230] sm:$0xff] }
  0x18   : > { %v303_v20 = vmul.f32 %v924_v17, %v302_v19  ;;  %675 = vmatpush.msrb.mxu0 %v611_v5  ;;  %v607_v19 = vld [vmem:[%s1508_s5 + $0x3c8] sm:$0xff]  ;;  %v558_v57 = vld [vmem:[%s1508_s5 + $0x240] sm:$0xff]  ;;  %v588_v62 = vld [vmem:[%s1508_s5 + $0x330] sm:$0xff] }
  0x19   : > { %636 = vmatpush.msra.mxu3 %v608_v12  ;;  %656 = vmatpush.msrb.mxu1 %v577_v13  ;;  %v590_v58 = vld [vmem:[%s1508_s5 + $0x340] sm:$0xff]  ;;  %v559_v59 = vld [vmem:[%s1508_s5 + $0x248] sm:$0xff]  ;;  %v589_v3 = vld [vmem:[%s1508_s5 + $0x338] sm:$0xff] }
  0x1a   : > { %292 = vadd.xlane.f32.xlu0 %v291_v10  ;;  %v304_v21 = vadd.f32 %v924_v17, %v303_v20  ;;  %v576_v10 = vld [vmem:[%s1508_s5 + $0x2d0] sm:$0xff]  ;;  %676 = vmatpush.msrb.mxu0 %v609_v14  ;;  %v591_v60 = vld [vmem:[%s1508_s5 + $0x348] sm:$0xff]  ;;  %v554_v5 = vld [vmem:[%s1508_s5 + $0x220] sm:$0xff] }
  0x1b   : > { %298 = vadd.xlane.f32.xlu1 %v297_v11  ;;  %616 = vmatpush.msra.mxu2 %v576_v10  ;;  %v586_v10 = vld [vmem:[%s1508_s5 + $0x320] sm:$0xff]  ;;  %v587_v12 = vld [vmem:[%s1508_s5 + $0x328] sm:$0xff]  ;;  %v552_v13 = vld [vmem:[%s1508_s5 + $0x210] sm:$0xff] }
  0x1c   : > { %v306_v25 = vsel %vm305_vm0, %v924_v17, %v304_v21  ;;  %v572_v21 = vld [vmem:[%s1508_s5 + $0x2b0] sm:$0xff]  ;;  %637 = vmatpush.msra.mxu3 %v606_v16  ;;  %657 = vmatpush.msrb.mxu1 %v575_v18  ;;  %v585_v16 = vld [vmem:[%s1508_s5 + $0x318] sm:$0xff]  ;;  %v582_v18 = vld [vmem:[%s1508_s5 + $0x300] sm:$0xff] }
  0x1d   : > { %617 = vmatpush.msra.mxu2 %v574_v15  ;;  %677 = vmatpush.msrb.mxu0 %v607_v19  ;;  %v584_v14 = vld [vmem:[%s1508_s5 + $0x310] sm:$0xff]  ;;  %v553_v15 = vld [vmem:[%s1508_s5 + $0x218] sm:$0xff]  ;;  %v551_v19 = vld [vmem:[%s1508_s5 + $0x208] sm:$0xff] }
  0x1e   : > { %638 = vmatpush.msra.mxu3 %v604_v22  ;;  %v548_v22 = vld [vmem:[%s1508_s5 + $0x1f0] sm:$0xff] }
  0x1f   : > { %618 = vmatpush.msra.mxu2 %v572_v21  ;;  %v516_v21 = vld [vmem:[%s1508_s5 + $0xf0] sm:$0xff] }
  0x85   : > { %v290_v23 = vpop.xlane.xlu0 %289 }
  0x86   : > { %v296_v24 = vpop.xlane.xlu1 %295  ;;  %v307_v27 = vmul.f32 %v306_v25, %v290_v23 }
  0x87   : > { %v309_v30 = vmul.f32 %v306_v25, %v296_v24 }
  0x88   : > { %v322_v36 = vperm.slane %v307_v27, %v321_v26  ;;  %v605_v26 = vld [vmem:[%s1508_s5 + $0x3b8] sm:$0xff] }
  0x89   : > { %v328_v38 = vperm.slane %v309_v30, %v327_v29  ;;  %678 = vmatpush.msrb.mxu0 %v605_v26  ;;  %v546_v26 = vld [vmem:[%s1508_s5 + $0x1e0] sm:$0xff] }
  0x8d   : > { %v293_v31 = vpop.xlane.xlu0 %292 }
  0x8e   : > { %v308_v33 = vmul.f32 %v306_v25, %v293_v31  ;;  %v299_v34 = vpop.xlane.xlu1 %298 }
  0x8f   : > { %v310_v35 = vmul.f32 %v306_v25, %v299_v34  ;;  %v573_v25 = vld [vmem:[%s1508_s5 + $0x2b8] sm:$0xff]  ;;  %v602_v34 = vld [vmem:[%s1508_s5 + $0x3a0] sm:$0xff] }
  0x90   : > { %v324_v37 = vperm.slane %v308_v33, %v323_v28  ;;  %658 = vmatpush.msrb.mxu1 %v573_v25  ;;  %v570_v33 = vld [vmem:[%s1508_s5 + $0x2a0] sm:$0xff]  ;;  %639 = vmatpush.msra.mxu3 %v602_v34 }
  0x91   : > { %v332_v39 = vperm.slane %v310_v35, %v331_v32  ;;  %v417_v32 = vadd.s32 8, %v1050_v48  ;;  %v571_v35 = vld [vmem:[%s1508_s5 + $0x2a8] sm:$0xff]  ;;  %619 = vmatpush.msra.mxu2 %v570_v33  ;;  %v597_v48 = vld [vmem:[%s1508_s5 + $0x378] sm:$0xff]  ;;  %v514_v25 = vld [vmem:[%s1508_s5 + $0xe0] sm:$0xff] }
  0x92   : > { %v326_v40 = vsel %vm325_vm1, %v324_v37, %v322_v36  ;;  %v603_v36 = vld [vmem:[%s1508_s5 + $0x3a8] sm:$0xff]  ;;  %v568_v37 = vld [vmem:[%s1508_s5 + $0x290] sm:$0xff]  ;;  %659 = vmatpush.msrb.mxu1 %v571_v35  ;;  %v510_v33 = vld [vmem:[%s1508_s5 + $0xc0] sm:$0xff] }
  0x93   : > { %v330_v41 = vsel %vm329_vm2, %v328_v38, %v326_v40  ;;  %v600_v38 = vld [vmem:[%s1508_s5 + $0x390] sm:$0xff]  ;;  %679 = vmatpush.msrb.mxu0 %v603_v36  ;;  %v601_v40 = vld [vmem:[%s1508_s5 + $0x398] sm:$0xff]  ;;  %620 = vmatpush.msra.mxu2 %v568_v37  ;;  %v542_v34 = vld [vmem:[%s1508_s5 + $0x1c0] sm:$0xff] }
  0x94   : > { %v334_v42 = vsel %vm333_vm3, %v332_v39, %v330_v41  ;;  %v569_v39 = vld [vmem:[%s1508_s5 + $0x298] sm:$0xff]  ;;  %v566_v41 = vld [vmem:[%s1508_s5 + $0x280] sm:$0xff]  ;;  %640 = vmatpush.msra.mxu3 %v600_v38  ;;  %v511_v35 = vld [vmem:[%s1508_s5 + $0xc8] sm:$0xff] }
  0x95   : > { %898 = vmatmul.msk.f32.vlgmr.msra.gmra.mxu0 %vm335_vm4, %v334_v42  ;;  %v598_v42 = vld [vmem:[%s1508_s5 + $0x380] sm:$0xff]  ;;  %660 = vmatpush.msrb.mxu1 %v569_v39  ;;  %v543_v36 = vld [vmem:[%s1508_s5 + $0x1c8] sm:$0xff]  ;;  %v508_v37 = vld [vmem:[%s1508_s5 + $0xb0] sm:$0xff] }
  0x96   : > { %680 = vmatpush.msrb.mxu0 %v601_v40  ;;  %621 = vmatpush.msra.mxu2 %v566_v41  ;;  %v540_v38 = vld [vmem:[%s1508_s5 + $0x1b0] sm:$0xff]  ;;  %v509_v39 = vld [vmem:[%s1508_s5 + $0xb8] sm:$0xff]  ;;  %v506_v41 = vld [vmem:[%s1508_s5 + $0xa0] sm:$0xff] }
  0x97   : > { %641 = vmatpush.msra.mxu3 %v598_v42  ;;  %661 = vmatpush.msrb.mxu1 %v567_v43  ;;  %v541_v40 = vld [vmem:[%s1508_s5 + $0x1b8] sm:$0xff]  ;;  %v538_v42 = vld [vmem:[%s1508_s5 + $0x1a0] sm:$0xff]  ;;  %v507_v43 = vld [vmem:[%s1508_s5 + $0xa8] sm:$0xff] }
 0x112   : > { %v355_v45 = vpop.f32.mrf.mxu0 }
 0x113   : > { %v356_v46 = vadd.f32 %v355_v45, %v315_v44  ;;  %v599_v44 = vld [vmem:[%s1508_s5 + $0x388] sm:$0xff]  ;;  %v564_v45 = vld [vmem:[%s1508_s5 + $0x270] sm:$0xff] }
 0x114   : > { %681 = vmatpush.msrb.mxu0 %v599_v44  ;;  %622 = vmatpush.msra.mxu2 %v564_v45  ;;  %v539_v44 = vld [vmem:[%s1508_s5 + $0x1a8] sm:$0xff]  ;;  %v504_v45 = vld [vmem:[%s1508_s5 + $0x90] sm:$0xff] }
 0x115   : > { %v358_v47 = vmax.f32 %v356_v46, 0.0  ;;  %v596_v46 = vld [vmem:[%s1508_s5 + $0x370] sm:$0xff] }
 0x116   : > { %642 = vmatpush.msra.mxu3 %v596_v46  ;;  %682 = vmatpush.msrb.mxu0 %v597_v48  ;;  %v536_v46 = vld [vmem:[%s1508_s5 + $0x190] sm:$0xff]  ;;  %v537_v48 = vld [vmem:[%s1508_s5 + $0x198] sm:$0xff] }
 0x117   : > { %900 = vmatmul.msk.f32.vlgmr.msra.gmra.mxu1 %vm361_vm6, %v358_v47  ;;  %v565_v47 = vld [vmem:[%s1508_s5 + $0x278] sm:$0xff] }
 0x118   : > { %662 = vmatpush.msrb.mxu1 %v565_v47  ;;  %643 = vmatpush.msra.mxu3 %v594_v50  ;;  %v505_v47 = vld [vmem:[%s1508_s5 + $0x98] sm:$0xff]  ;;  %v534_v50 = vld [vmem:[%s1508_s5 + $0x180] sm:$0xff] }
 0x194   : > { %v386_v52 = vpop.f32.mrf.mxu1 }
 0x195   : > { %v387_v53 = vadd.f32 %v386_v52, %v360_v51  ;;  %v563_v51 = vld [vmem:[%s1508_s5 + $0x268] sm:$0xff] }
 0x196   : > { %v595_v52 = vld [vmem:[%s1508_s5 + $0x368] sm:$0xff]  ;;  %663 = vmatpush.msrb.mxu1 %v563_v51 }
 0x197   : > { %v901_v54 = vmul.f32 -1.442695, %v387_v53  ;;  %v560_v53 = vld [vmem:[%s1508_s5 + $0x250] sm:$0xff]  ;;  %683 = vmatpush.msrb.mxu0 %v595_v52  ;;  %v503_v51 = vld [vmem:[%s1508_s5 + $0x88] sm:$0xff] }
 0x198   : > { %v535_v52 = vld [vmem:[%s1508_s5 + $0x188] sm:$0xff] }
 0x199   : > { %925 = vpow2.f32 %v901_v54  ;;  %v592_v54 = vld [vmem:[%s1508_s5 + $0x350] sm:$0xff] }
 0x19a   : > { %644 = vmatpush.msra.mxu3 %v592_v54  ;;  %v532_v54 = vld [vmem:[%s1508_s5 + $0x170] sm:$0xff] }
 0x19c   : > { %645 = vmatpush.msra.mxu3 %v590_v58  ;;  %v530_v58 = vld [vmem:[%s1508_s5 + $0x160] sm:$0xff] }
 0x19e   : > { %646 = vmatpush.msra.mxu3 %v588_v62  ;;  %v528_v62 = vld [vmem:[%s1508_s5 + $0x150] sm:$0xff] }
 0x19f   : > { %v926_v55 = vpop.eup %925 }
 0x1a0   : > { %v392_v56 = vadd.f32 1.0, %v926_v55  ;;  %v561_v55 = vld [vmem:[%s1508_s5 + $0x258] sm:$0xff]  ;;  %647 = vmatpush.msra.mxu3 %v586_v10  ;;  %v494_v10 = vld [vmem:[%s1508_s5 + $0x40] sm:$0xff] }
 0x1a1   : > { %664 = vmatpush.msrb.mxu1 %v561_v55  ;;  %v501_v55 = vld [vmem:[%s1508_s5 + $0x78] sm:$0xff] }
 0x1a2   : > { %927 = vrcp.f32 %v392_v56  ;;  %v404_v20 = vand.u32 2147483648, %v392_v56  ;;  %v402_v24 = vand.u32 2147483647, %v392_v56  ;;  %vm398_vm8 = vweird.f32 %v392_v56  ;;  %648 = vmatpush.msra.mxu3 %v584_v14 }
 0x1a3   : > { %665 = vmatpush.msrb.mxu1 %v559_v59  ;;  %v499_v59 = vld [vmem:[%s1508_s5 + $0x68] sm:$0xff]  ;;  %v948_v14 = vmov 32.0  }
 0x1a4   : > { %v405_v28 = vor.u32 1.1754944e-38, %v404_v20  ;;  %vm403_vm10 = vcmp.eq.f32.partialorder %v402_v24, 8.507059e+37  ;;  %v583_v20 = vld [vmem:[%s1508_s5 + $0x308] sm:$0xff]  ;;  %649 = vmatpush.msra.mxu3 %v582_v18  ;;  %v549_v24 = vld [vmem:[%s1508_s5 + $0x1f8] sm:$0xff]  ;;  %929 = vrcp.f32 %v948_v14 }
 0x1a5   : > { %v525_v18 = vld [vmem:[%s1508_s5 + $0x138] sm:$0xff] }
 0x1a6   : > { %714 = vmatpush.msrb.mxu3 %v548_v22  ;;  %v523_v22 = vld [vmem:[%s1508_s5 + $0x128] sm:$0xff] }
 0x1a8   : > { %v928_v63 = vpop.eup %927  ;;  %715 = vmatpush.msrb.mxu3 %v546_v26  ;;  %v521_v26 = vld [vmem:[%s1508_s5 + $0x118] sm:$0xff] }
 0x1a9   : > { %v394_v11 = vmul.f32 %v928_v63, %v392_v56  ;;  %vm399_vm7 = vweird.f32 %v928_v63  ;;  %v593_v56 = vld [vmem:[%s1508_s5 + $0x358] sm:$0xff] }
 0x1aa   : > { %vm400_vm9 = vmor %vm398_vm8, %vm399_vm7  ;;  %684 = vmatpush.msrb.mxu0 %v593_v56  ;;  %v533_v56 = vld [vmem:[%s1508_s5 + $0x178] sm:$0xff] }
 0x1ab   : > { %v395_v17 = vsub.f32 1.0, %v394_v11  ;;  %v555_v11 = vld [vmem:[%s1508_s5 + $0x228] sm:$0xff] }
 0x1ac   : > { %685 = vmatpush.msrb.mxu0 %v591_v60  ;;  %v531_v60 = vld [vmem:[%s1508_s5 + $0x168] sm:$0xff] }
 0x1ad   : > { %v396_v23 = vmul.f32 %v928_v63, %v395_v17  ;;  %v550_v17 = vld [vmem:[%s1508_s5 + $0x200] sm:$0xff] }
 0x1ae   : > { %686 = vmatpush.msrb.mxu0 %v589_v3  ;;  %v529_v3 = vld [vmem:[%s1508_s5 + $0x158] sm:$0xff] }
 0x1af   : > { %v397_v27 = vadd.f32 %v928_v63, %v396_v23  ;;  %v517_v23 = vld [vmem:[%s1508_s5 + $0xf8] sm:$0xff] }
 0x1b0   : > { %687 = vmatpush.msrb.mxu0 %v587_v12  ;;  %v495_v12 = vld [vmem:[%s1508_s5 + $0x48] sm:$0xff] }
 0x1b1   : > { %v401_v29 = vsel %vm400_vm9, %v928_v63, %v397_v27  ;;  %v557_v63 = vld [vmem:[%s1508_s5 + $0x238] sm:$0xff]  ;;  %v515_v27 = vld [vmem:[%s1508_s5 + $0xe8] sm:$0xff] }
 0x1b2   : > { %v406_v30 = vsel %vm403_vm10, %v405_v28, %v401_v29  ;;  %666 = vmatpush.msrb.mxu1 %v557_v63  ;;  %688 = vmatpush.msrb.mxu0 %v585_v16  ;;  %v547_v28 = vld [vmem:[%s1508_s5 + $0x1e8] sm:$0xff]  ;;  %v512_v29 = vld [vmem:[%s1508_s5 + $0xd0] sm:$0xff]  ;;  %v497_v63 = vld [vmem:[%s1508_s5 + $0x58] sm:$0xff] }
 0x1b3   : > { %v408_v31 = vperm.slane %v406_v30, 0  ;;  %v544_v30 = vld [vmem:[%s1508_s5 + $0x1d0] sm:$0xff] }
 0x1b4   : > { %667 = vmatpush.msrb.mxu1 %v555_v11  ;;  %689 = vmatpush.msrb.mxu0 %v583_v20  ;;  %v526_v11 = vld [vmem:[%s1508_s5 + $0x140] sm:$0xff]  ;;  %v524_v16 = vld [vmem:[%s1508_s5 + $0x130] sm:$0xff] }
 0x1b5   : > { %431 = vperm.xlu1 %921, %v408_v31   ;;  %425 = vperm.xlu0 %920, %v408_v31   ;;  %v522_v20 = vld [vmem:[%s1508_s5 + $0x120] sm:$0xff] }
 0x1b6   : > { %413 = vperm.xlu2 %918, %v408_v31   ;;  %668 = vmatpush.msrb.mxu1 %v553_v15  ;;  %v492_v15 = vld [vmem:[%s1508_s5 + $0x30] sm:$0xff] }
 0x1b7   : > { %754 = vmatpush.msra.mxu0 %v549_v24  ;;  %716 = vmatpush.msrb.mxu3 %v544_v30  ;;  %v520_v24 = vld [vmem:[%s1508_s5 + $0x110] sm:$0xff]  ;;  %v487_v30 = vld [vmem:[%s1508_s5 + $0x8] sm:$0xff] }
 0x1b8   : > { %669 = vmatpush.msrb.mxu1 %v551_v19  ;;  %v490_v19 = vld [vmem:[%s1508_s5 + $0x20] sm:$0xff] }
 0x1b9   : > { %755 = vmatpush.msra.mxu0 %v547_v28  ;;  %717 = vmatpush.msrb.mxu3 %v542_v34  ;;  %v486_v28 = vld [vmem:[%s1508_s5] sm:$0xff] }
 0x1ba   : > { %734 = vmatpush.msra.mxu1 %v517_v23  ;;  %v488_v23 = vld [vmem:[%s1508_s5 + $0x10] sm:$0xff] }
 0x1bb   : > { %718 = vmatpush.msrb.mxu3 %v540_v38 }
 0x1bc   : > { %735 = vmatpush.msra.mxu1 %v515_v27 }
 0x1bd   : > { %922 = vset.pattern.permute.xlu0 %v1054_v49  ;;  %v562_v49 = vld [vmem:[%s1508_s5 + $0x260] sm:$0xff]  ;;  %719 = vmatpush.msrb.mxu3 %v538_v42 }
 0x1be   : > { %919 = vset.pattern.permute.xlu2 %v417_v32  ;;  %623 = vmatpush.msra.mxu2 %v562_v49  ;;  %v545_v32 = vld [vmem:[%s1508_s5 + $0x1d8] sm:$0xff]  ;;  %v502_v49 = vld [vmem:[%s1508_s5 + $0x80] sm:$0xff] }
 0x1bf   : > { %756 = vmatpush.msra.mxu0 %v545_v32  ;;  %720 = vmatpush.msrb.mxu3 %v536_v46  ;;  %v930_v32 = vpop.eup %929 }
 0x1c0   : > { %624 = vmatpush.msra.mxu2 %v560_v53  ;;  %v500_v53 = vld [vmem:[%s1508_s5 + $0x70] sm:$0xff]  ;;  %vm482_vm11 = vweird.f32 %v930_v32 }
 0x1c1   : > { %757 = vmatpush.msra.mxu0 %v543_v36  ;;  %721 = vmatpush.msrb.mxu3 %v534_v50 }
 0x1c2   : > { %625 = vmatpush.msra.mxu2 %v558_v57  ;;  %v498_v57 = vld [vmem:[%s1508_s5 + $0x60] sm:$0xff] }
 0x1c3   : > { %758 = vmatpush.msra.mxu0 %v541_v40  ;;  %722 = vmatpush.msrb.mxu3 %v532_v54 }
 0x1c4   : > { %626 = vmatpush.msra.mxu2 %v556_v61  ;;  %v496_v61 = vld [vmem:[%s1508_s5 + $0x50] sm:$0xff] }
 0x1c5   : > { %759 = vmatpush.msra.mxu0 %v539_v44  ;;  %723 = vmatpush.msrb.mxu3 %v530_v58 }
 0x1c6   : > { %419 = vperm.xlu2 %919, %v408_v31   ;;  %627 = vmatpush.msra.mxu2 %v554_v5  ;;  %v513_v31 = vld [vmem:[%s1508_s5 + $0xd8] sm:$0xff] }
 0x1c7   : > { %736 = vmatpush.msra.mxu1 %v513_v31  ;;  %760 = vmatpush.msra.mxu0 %v537_v48  ;;  %v519_v31 = vld [vmem:[%s1508_s5 + $0x108] sm:$0xff] }
 0x1c8   : > { %628 = vmatpush.msra.mxu2 %v552_v13  ;;  %724 = vmatpush.msrb.mxu3 %v528_v62  ;;  %v527_v13 = vld [vmem:[%s1508_s5 + $0x148] sm:$0xff] }
 0x1c9   : > { %737 = vmatpush.msra.mxu1 %v511_v35  ;;  %761 = vmatpush.msra.mxu0 %v535_v52 }
 0x1ca   : > { %629 = vmatpush.msra.mxu2 %v550_v17  ;;  %725 = vmatpush.msrb.mxu3 %v526_v11  ;;  %v493_v17 = vld [vmem:[%s1508_s5 + $0x38] sm:$0xff] }
 0x1cb   : > { %738 = vmatpush.msra.mxu1 %v509_v39  ;;  %762 = vmatpush.msra.mxu0 %v533_v56  ;;  %v478_v39 = vmul.f32 32.0, %v930_v32 }
 0x1cc   : > { %694 = vmatpush.msrb.mxu2 %v516_v21  ;;  %726 = vmatpush.msrb.mxu3 %v524_v16  ;;  %v491_v21 = vld [vmem:[%s1508_s5 + $0x28] sm:$0xff] }
 0x1cd   : > { %739 = vmatpush.msra.mxu1 %v507_v43  ;;  %763 = vmatpush.msra.mxu0 %v531_v60  ;;  %v479_v46 = vsub.f32 1.0, %v478_v39 }
 0x1ce   : > { %695 = vmatpush.msrb.mxu2 %v514_v25  ;;  %727 = vmatpush.msrb.mxu3 %v522_v20  ;;  %v489_v25 = vld [vmem:[%s1508_s5 + $0x18] sm:$0xff] }
 0x1cf   : > { %740 = vmatpush.msra.mxu1 %v505_v47  ;;  %764 = vmatpush.msra.mxu0 %v529_v3 }
 0x1d0   : > { %696 = vmatpush.msrb.mxu2 %v512_v29  ;;  %v518_v29 = vld [vmem:[%s1508_s5 + $0x100] sm:$0xff]  ;;  %728 = vmatpush.msrb.mxu3 %v520_v24 }
 0x1d1   : > { %741 = vmatpush.msra.mxu1 %v503_v51  ;;  %765 = vmatpush.msra.mxu0 %v527_v13 }
 0x1d2   : > { %697 = vmatpush.msrb.mxu2 %v510_v33  ;;  %729 = vmatpush.msrb.mxu3 %v518_v29 }
 0x1d3   : > { %742 = vmatpush.msra.mxu1 %v501_v55  ;;  %766 = vmatpush.msra.mxu0 %v525_v18 }
 0x1d4   : > { %698 = vmatpush.msrb.mxu2 %v508_v37 }
 0x1d5   : > { %743 = vmatpush.msra.mxu1 %v499_v59  ;;  %767 = vmatpush.msra.mxu0 %v523_v22 }
 0x1d6   : > { %699 = vmatpush.msrb.mxu2 %v506_v41 }
 0x1d7   : > { %744 = vmatpush.msra.mxu1 %v497_v63  ;;  %768 = vmatpush.msra.mxu0 %v521_v26 }
 0x1d8   : > { %700 = vmatpush.msrb.mxu2 %v504_v45 }
 0x1d9   : > { %745 = vmatpush.msra.mxu1 %v495_v12  ;;  %769 = vmatpush.msra.mxu0 %v519_v31 }
 0x1da   : > { %701 = vmatpush.msrb.mxu2 %v502_v49 }
 0x1db   : > { %746 = vmatpush.msra.mxu1 %v493_v17 }
 0x1dc   : > { %702 = vmatpush.msrb.mxu2 %v500_v53  ;;  %v480_v53 = vmul.f32 %v930_v32, %v479_v46 }
 0x1dd   : > { %747 = vmatpush.msra.mxu1 %v491_v21 }
 0x1de   : > { %703 = vmatpush.msrb.mxu2 %v498_v57  ;;  %v481_v60 = vadd.f32 %v930_v32, %v480_v53 }
 0x1df   : > { %748 = vmatpush.msra.mxu1 %v489_v25 }
 0x1e0   : > { %704 = vmatpush.msrb.mxu2 %v496_v61  ;;  %v483_v11 = vsel %vm482_vm11, %v930_v32, %v481_v60 }
 0x1e1   : > { %749 = vmatpush.msra.mxu1 %v487_v30  ;;  %v775_v30 = vstv %s774_s28 }
 0x1e2   : > { %705 = vmatpush.msrb.mxu2 %v494_v10 }
 0x1e4   : > { %706 = vmatpush.msrb.mxu2 %v492_v15 }
 0x1e6   : > { %707 = vmatpush.msrb.mxu2 %v490_v19 }
 0x1e8   : > { %708 = vmatpush.msrb.mxu2 %v488_v23 }
 0x1ea   : > { %709 = vmatpush.msrb.mxu2 %v486_v28 }
 0x210   : > { %v414_v5 = vpop.permute.xlu2 %413 }
 0x211   : > { %v1454_v35 = vmul.f32 %v414_v5, %v1008_v0  ;;  %v1457_v36 = vmul.f32 %v414_v5, %v1010_v1 }
 0x220   : > { %v420_v27 = vpop.permute.xlu2 %419 }
 0x221   : > { %v1448_v33 = vmul.f32 %v420_v27, %v1020_v6  ;;  %v1451_v34 = vmul.f32 %v420_v27, %v1022_v7 }
 0x223   : > { %v459_v0 = vadd.f32 %v1448_v33, %v1454_v35  ;;  %v468_v1 = vadd.f32 %v1451_v34, %v1457_v36 }
 0x227   : > { %v432_v37 = vpop.permute.xlu1 %431  ;;  %v426_v38 = vpop.permute.xlu0 %425 }
 0x228   : > { %v1460_v40 = vmul.f32 %v432_v37, %v1024_v8  ;;  %v1463_v6 = vmul.f32 %v432_v37, %v1026_v9  ;;  %v1466_v7 = vmul.f32 %v426_v38, %v1012_v2  ;;  %v1469_v41 = vmul.f32 %v426_v38, %v1016_v4 }
 0x22a   : > { %v442_v42 = vmax.f32 %v1448_v33, %v1460_v40  ;;  %v451_v8 = vmax.f32 %v1451_v34, %v1463_v6  ;;  %v441_v9 = vmax.f32 %v1454_v35, %v1466_v7  ;;  %v450_v2 = vmax.f32 %v1457_v36, %v1469_v41 }
 0x22b   : > { %v460_v4 = vadd.f32 %v459_v0, %v1466_v7  ;;  %v469_v43 = vadd.f32 %v468_v1, %v1469_v41 }
 0x22c   : > { %v443_v44 = vmax.f32 %v441_v9, %v442_v42  ;;  %v452_v45 = vmax.f32 %v450_v2, %v451_v8 }
 0x22d   : > { %v461_v47 = vadd.f32 %v460_v4, %v1460_v40  ;;  %v470_v48 = vadd.f32 %v469_v43, %v1463_v6 }
 0x22e   : > { %v444_v49 = vrot.slane %v443_v44, 4  ;;  %v453_v50 = vrot.slane %v452_v45, 4 }
 0x22f   : > { %v462_v51 = vrot.slane %v461_v47, 4  ;;  %v471_v52 = vrot.slane %v470_v48, 4 }
 0x230   : > { %v445_v58 = vmax.f32 %v443_v44, %v444_v49  ;;  %v454_v59 = vmax.f32 %v452_v45, %v453_v50 }
 0x231   : > { %v463_v54 = vadd.f32 %v462_v51, %v461_v47  ;;  %v472_v55 = vadd.f32 %v471_v52, %v470_v48 }
 0x232   : > { %v446_v5 = vrot.slane %v445_v58, 2  ;;  %v455_v10 = vrot.slane %v454_v59, 2 }
 0x233   : > { %v464_v56 = vrot.slane %v463_v54, 2  ;;  %v473_v57 = vrot.slane %v472_v55, 2 }
 0x234   : > { %v447_v16 = vmax.f32 %v445_v58, %v446_v5  ;;  %v456_v17 = vmax.f32 %v454_v59, %v455_v10 }
 0x235   : > { %v465_v61 = vadd.f32 %v464_v56, %v463_v54  ;;  %v474_v62 = vadd.f32 %v473_v57, %v472_v55 }
 0x236   : > { %v448_v18 = vrot.slane %v447_v16, 1  ;;  %v457_v19 = vrot.slane %v456_v17, 1 }
 0x237   : > { %v466_v63 = vrot.slane %v465_v61, 1  ;;  %v475_v3 = vrot.slane %v474_v62, 1 }
 0x238   : > { %v449_v20 = vmax.f32 %v447_v16, %v448_v18  ;;  %v458_v21 = vmax.f32 %v456_v17, %v457_v19 }
 0x239   : > { %v467_v12 = vadd.f32 %v466_v63, %v465_v61  ;;  %v476_v13 = vadd.f32 %v475_v3, %v474_v62 }
 0x23b   : > { %v484_v14 = vmul.f32 %v483_v11, %v467_v12  ;;  %v485_v15 = vmul.f32 %v483_v11, %v476_v13 }
 0x23d   : > { %630 = vmatmul.f32.vlgmr.msra.gmra.mxu2 %v484_v14  ;;  %650 = vmatmul.f32.vlgmr.msra.gmra.mxu3 %v485_v15 }
 0x23e   : > { %670 = vmatmul.f32.vlgmr.msrb.gmra.mxu1 %v484_v14  ;;  %690 = vmatmul.f32.vlgmr.msrb.gmra.mxu0 %v485_v15 }
 0x245   : > { %710 = vmatmul.f32.vlgmr.msrb.gmra.mxu2 %v449_v20  ;;  %730 = vmatmul.f32.vlgmr.msrb.gmra.mxu3 %v458_v21 }
 0x246   : > { %750 = vmatmul.f32.vlgmr.msra.gmra.mxu1 %v449_v20  ;;  %770 = vmatmul.f32.vlgmr.msra.gmra.mxu0 %v458_v21 }
 0x2bb   : > { %v671_v22 = vpop.f32.mrf.mxu1  ;;  %v691_v23 = vpop.f32.mrf.mxu0 }
 0x2bc   : > { %v692_v26 = vadd.f32 %v691_v23, %v671_v22 }
 0x2c0   : > { %v631_v24 = vpop.f32.mrf.mxu2  ;;  %v651_v25 = vpop.f32.mrf.mxu3 }
 0x2c1   : > { %v652_v32 = vadd.f32 %v651_v25, %v631_v24 }
 0x2c3   : > { %v751_v27 = vpop.f32.mrf.mxu1  ;;  %v771_v29 = vpop.f32.mrf.mxu0 }
 0x2c4   : > { %v752_v28 = vadd.f32 %v751_v27, %v692_v26 }
 0x2c6   : > { %v772_v31 = vadd.f32 %v771_v29, %v752_v28 }
 0x2c8   : > { %v777_v37 = vadd.f32 %v775_v30, %v772_v31  ;;  %v711_v38 = vpop.f32.mrf.mxu2  ;;  %v731_v1 = vpop.f32.mrf.mxu3 }
 0x2c9   : > { %v712_v39 = vadd.f32 %v711_v38, %v652_v32 }
 0x2ca   : > { %v903_v0 = vmul.f32 -1.442695, %v777_v37 }
 0x2cb   : > { %v732_v42 = vadd.f32 %v731_v1, %v712_v39 }
 0x2cc   : > { %931 = vpow2.f32 %v903_v0 }
 0x2cd   : > { %v776_v8 = vadd.f32 %v775_v30, %v732_v42 }
 0x2cf   : > { %v902_v9 = vmul.f32 -1.442695, %v776_v8 }
 0x2d1   : > { %933 = vpow2.f32 %v902_v9 }
 0x2d2   : > { %v932_v2 = vpop.eup %931 }
 0x2d3   : > { %v785_v4 = vadd.f32 1.0, %v932_v2 }
 0x2d5   : > { %935 = vrcp.f32 %v785_v4  ;;  %v812_v48 = vand.u32 2147483648, %v785_v4  ;;  %v810_v51 = vand.u32 2147483647, %v785_v4  ;;  %vm806_vm13 = vweird.f32 %v785_v4 }
 0x2d7   : > { %v934_v43 = vpop.eup %933  ;;  %v813_v54 = vor.u32 1.1754944e-38, %v812_v48  ;;  %vm811_vm15 = vcmp.eq.f32.partialorder %v810_v51, 8.507059e+37 }
 0x2d8   : > { %v784_v44 = vadd.f32 1.0, %v934_v43 }
 0x2da   : > { %937 = vrcp.f32 %v784_v44  ;;  %v797_v57 = vand.u32 2147483648, %v784_v44  ;;  %v795_v60 = vand.u32 2147483647, %v784_v44  ;;  %vm791_vm1 = vweird.f32 %v784_v44 }
 0x2db   : > { %v936_v45 = vpop.eup %935 }
 0x2dc   : > { %v802_v46 = vmul.f32 %v936_v45, %v785_v4  ;;  %vm807_vm12 = vweird.f32 %v936_v45  ;;  %v798_v10 = vor.u32 1.1754944e-38, %v797_v57  ;;  %vm796_vm3 = vcmp.eq.f32.partialorder %v795_v60, 8.507059e+37 }
 0x2dd   : > { %vm808_vm14 = vmor %vm806_vm13, %vm807_vm12 }
 0x2de   : > { %v803_v47 = vsub.f32 1.0, %v802_v46 }
 0x2e0   : > { %v938_v49 = vpop.eup %937  ;;  %v804_v50 = vmul.f32 %v936_v45, %v803_v47 }
 0x2e1   : > { %v787_v52 = vmul.f32 %v938_v49, %v784_v44  ;;  %vm792_vm0 = vweird.f32 %v938_v49 }
 0x2e2   : > { %v805_v53 = vadd.f32 %v936_v45, %v804_v50  ;;  %vm793_vm2 = vmor %vm791_vm1, %vm792_vm0 }
 0x2e3   : > { %v788_v55 = vsub.f32 1.0, %v787_v52 }
 0x2e4   : > { %v809_v56 = vsel %vm808_vm14, %v936_v45, %v805_v53 }
 0x2e5   : > { %v814_v58 = vsel %vm811_vm15, %v813_v54, %v809_v56  ;;  %v789_v59 = vmul.f32 %v938_v49, %v788_v55 }
 0x2e6   : > { %v817_v61 = vperm.slane %v814_v58, 0 }
 0x2e7   : > { %v790_v62 = vadd.f32 %v938_v49, %v789_v59 }
 0x2e8   : > { %v819_v63 = vmul.f32 %v817_v61, %v1457_v36  ;;  %v821_v3 = vmul.f32 %v817_v61, %v1451_v34  ;;  %v823_v5 = vmul.f32 %v817_v61, %v1469_v41  ;;  %v825_v11 = vmul.f32 %v817_v61, %v1463_v6 }
 0x2e9   : > { %v794_v12 = vsel %vm793_vm2, %v938_v49, %v790_v62 }
 0x2ea   : > { %827 = vst [vmem:[%s279_s8 + $0x8] sm:$0xff] %v819_v63  ;;  %v799_v13 = vsel %vm796_vm3, %v798_v10, %v794_v12 }
 0x2eb   : > { %829 = vst [vmem:[%s279_s8 + $0x18] sm:$0xff] %v821_v3  ;;  %v816_v14 = vperm.slane %v799_v13, 0 }
 0x2ec   : > { %831 = vst [vmem:[%s279_s8 + $0x28] sm:$0xff] %v823_v5 }
 0x2ed   : > { %833 = vst [vmem:[%s279_s8 + $0x38] sm:$0xff] %v825_v11  ;;  %v818_v15 = vmul.f32 %v816_v14, %v1454_v35  ;;  %v820_v36 = vmul.f32 %v816_v14, %v1448_v33  ;;  %v822_v34 = vmul.f32 %v816_v14, %v1466_v7  ;;  %v824_v41 = vmul.f32 %v816_v14, %v1460_v40 }
 0x2ef   : > { %826 = vst [vmem:[%s279_s8] sm:$0xff] %v818_v15 }
 0x2f0   : > { %828 = vst [vmem:[%s279_s8 + $0x10] sm:$0xff] %v820_v36 }
 0x2f1   : > { %830 = vst [vmem:[%s279_s8 + $0x20] sm:$0xff] %v822_v34 }
 0x2f2   : > { %832 = vst [vmem:[%s279_s8 + $0x30] sm:$0xff] %v824_v41 }
 0x2f3 PF: > { %s18_s26 = sadd.s32 1, %s945_s26  }
 0x2f4   : > { %p15_p4 = scmp.ge.s32.totalorder %s18_s26, 4  }
 0x2f6   :  { %17 = sbr.rel (!%p15_p4) target bundleno = 2 (0x2), region = 78 }

</bundles_post_ra>
